<compile_context>
chip_gen: v7x
topology: tpu7x:2x2x1
jax: 0.10.0
libtpu: 0.0.40
codegen_flags: <defaults>
</compile_context>

<pallas_src>
import jax
import jax.numpy as jnp
from jax.experimental import pallas as pl
from jax.experimental.pallas import tpu as pltpu


def critic_kernel(x_ref, w_ref, b_ref, wf_ref, bf_ref, out_ref):
    # x: (TB, S+A), w: (S+A, 64), b: (1, 64), wf: (1, 64), bf: (1, 1)
    pre = jnp.dot(x_ref[...], w_ref[...],
                  preferred_element_type=jnp.float32) + b_ref[...]
    h = jnp.maximum(pre, 0.0)
    # (64, 1) head off the MXU: broadcast-mul (VPU) + lane reduce (XLU).
    out_ref[...] = (jnp.sum(h * wf_ref[...], axis=-1, keepdims=True)
                    + bf_ref[...])


def _round_up(x, m):
    return ((x + m - 1) // m) * m


def critic_forward(state, action, params, *, tile_b=512):
    """state: (B, S) f32, action: (B, A) f32 -> (B, 1) f32."""
    B = state.shape[0]

    # --- offline algebraic folding (no nonlinearity inside each pair) -------
    ws = params["ws1"] @ params["ws2"]                    # (S, 64)
    bs = params["bs1"] @ params["ws2"] + params["bs2"]    # (1, 64)
    wa = params["wa1"] @ params["wa2"]                    # (A, 64)
    ba = params["ba1"] @ params["wa2"] + params["ba2"]    # (1, 64)
    w_fused = jnp.concatenate([ws, wa], axis=0)           # (S+A, 64)
    b_fused = bs + ba                                     # (1, 64)
    wf_row = params["wf"].T                               # (1, 64)
    bf = params["bf"]                                     # (1, 1)

    x = jnp.concatenate([state, action], axis=1)          # (B, S+A)
    d_in = x.shape[1]

    # --- batch tiling --------------------------------------------------------
    tb = min(tile_b, _round_up(B, 8))
    b_pad = _round_up(B, tb)
    if b_pad != B:
        x = jnp.pad(x, ((0, b_pad - B), (0, 0)))
    grid = (b_pad // tb,)

    const = lambda i: (0, 0)   # weights/biases stay resident across the grid
    out = pl.pallas_call(
        critic_kernel,
        out_shape=jax.ShapeDtypeStruct((b_pad, 1), jnp.float32),
        grid=grid,
        in_specs=[
            pl.BlockSpec((tb, d_in), lambda i: (i, 0)),   # streamed activations
            pl.BlockSpec((d_in, 64), const),              # fused weights
            pl.BlockSpec((1, 64), const),                 # fused bias
            pl.BlockSpec((1, 64), const),                 # head weight row
            pl.BlockSpec((1, 1), const),                  # head bias
        ],
        # Output last-dim is 1 (masked store) — negligible here since the
        # output is tiny; could be widened to a 128-lane slab if it ever
        # shows up in a profile.
        out_specs=pl.BlockSpec((tb, 1), lambda i: (i, 0)),
        compiler_params=pltpu.CompilerParams(
            dimension_semantics=("parallel",)),
    )(x, w_fused, b_fused, wf_row, bf)
    return out[:B]


def init_params(key, state_dim, action_dim):
    """Deterministic init mirroring the PyTorch module:
       weight ~ N(0, 0.1), bias ~ N(0.1, 1.0). Weights stored (in, out)."""
    ks = jax.random.split(key, 10)

    def w(k, shape):
        return (0.1 * jax.random.normal(k, shape)).astype(jnp.float32)

    def b(k, n):
        return (0.1 + jax.random.normal(k, (1, n))).astype(jnp.float32)

    return {
        "ws1": w(ks[0], (state_dim, 128)),  "bs1": b(ks[1], 128),
        "ws2": w(ks[2], (128, 64)),         "bs2": b(ks[3], 64),
        "wa1": w(ks[4], (action_dim, 128)), "ba1": b(ks[5], 128),
        "wa2": w(ks[6], (128, 64)),         "ba2": b(ks[7], 64),
        "wf":  w(ks[8], (64, 1)),           "bf":  b(ks[9], 1),
    }


def critic_reference(state, action, p):
    s2 = (state @ p["ws1"] + p["bs1"]) @ p["ws2"] + p["bs2"]
    a2 = (action @ p["wa1"] + p["ba1"]) @ p["wa2"] + p["ba2"]
    return jnp.maximum(s2 + a2, 0.0) @ p["wf"] + p["bf"]


if __name__ == "__main__":
    key = jax.random.PRNGKey(0)
    k_param, k_state, k_action = jax.random.split(key, 3)

    batch, state_dim, action_dim = 8, 16, 8
    params = init_params(k_param, state_dim, action_dim)
    state = jax.random.normal(k_state, (batch, state_dim), dtype=jnp.float32)
    action = jax.random.normal(k_action, (batch, action_dim), dtype=jnp.float32)

    out = jax.block_until_ready(critic_forward(state, action, params))
    ref = critic_reference(state, action, params)
    assert out.shape == (batch, 1)
    assert jnp.allclose(out, ref, atol=1e-4, rtol=1e-4), "mismatch vs reference"

    # Multi-tile / padded-batch path (grid > 1, batch not a tile multiple).
    b2 = 40
    k_s2, k_a2 = jax.random.split(jax.random.PRNGKey(1), 2)
    state2 = jax.random.normal(k_s2, (b2, state_dim), dtype=jnp.float32)
    action2 = jax.random.normal(k_a2, (b2, action_dim), dtype=jnp.float32)
    out2 = jax.block_until_ready(
        critic_forward(state2, action2, params, tile_b=16))
    ref2 = critic_reference(state2, action2, params)
    assert out2.shape == (b2, 1)
    assert jnp.allclose(out2, ref2, atol=1e-4, rtol=1e-4), "mismatch (tiled)"

    print("KERNEL_OK")
</pallas_src>

<mosaic_0001>
module attributes {stable_mosaic.version = 11 : i64} {
  func.func @critic_kernel(%arg0: i32, %arg1: memref<8x24xf32, #tpu.memory_space<vmem>>, %arg2: memref<24x64xf32, #tpu.memory_space<vmem>>, %arg3: memref<1x64xf32, #tpu.memory_space<vmem>>, %arg4: memref<1x64xf32, #tpu.memory_space<vmem>>, %arg5: memref<1x1xf32, #tpu.memory_space<vmem>>, %arg6: memref<8x1xf32, #tpu.memory_space<vmem>>) attributes {dimension_semantics = [#tpu.dimension_semantics<parallel>], iteration_bounds = array<i64: 1>, scalar_prefetch = 0 : i64, scratch_operands = 0 : i64, tpu.core_type = #tpu.core_type<tc>, window_params = [{transform_indices = @transform_0, window_bounds = array<i64: 8, 24>}, {pipeline_mode = #tpu.pipeline_mode<synchronous>, transform_indices = @transform_1, window_bounds = array<i64: 24, 64>}, {pipeline_mode = #tpu.pipeline_mode<synchronous>, transform_indices = @transform_2, window_bounds = array<i64: 1, 64>}, {pipeline_mode = #tpu.pipeline_mode<synchronous>, transform_indices = @transform_3, window_bounds = array<i64: 1, 64>}, {pipeline_mode = #tpu.pipeline_mode<synchronous>, transform_indices = @transform_4, window_bounds = array<i64: 1, 1>}, {transform_indices = @transform_5, window_bounds = array<i64: 8, 1>}]} {
    %c0 = arith.constant 0 : index
    %c0_0 = arith.constant 0 : index
    %0 = vector.load %arg1[%c0, %c0_0] : memref<8x24xf32, #tpu.memory_space<vmem>>, vector<8x24xf32>
    %c0_1 = arith.constant 0 : index
    %c0_2 = arith.constant 0 : index
    %1 = vector.load %arg2[%c0_1, %c0_2] : memref<24x64xf32, #tpu.memory_space<vmem>>, vector<24x64xf32>
    %cst = arith.constant dense<0.000000e+00> : vector<8x64xf32>
    %2 = tpu.matmul %0, %1, %cst {dimension_numbers = #tpu.dot_dimension_numbers<[1], [0], [0], [1], [0, 0, 1, 1], [], []>} : vector<8x24xf32>, vector<24x64xf32>, vector<8x64xf32> -> vector<8x64xf32>
    %c0_3 = arith.constant 0 : index
    %c0_4 = arith.constant 0 : index
    %3 = vector.load %arg3[%c0_3, %c0_4] : memref<1x64xf32, #tpu.memory_space<vmem>>, vector<1x64xf32>
    %4 = vector.broadcast %3 : vector<1x64xf32> to vector<8x64xf32>
    %5 = arith.addf %2, %4 : vector<8x64xf32>
    %cst_5 = arith.constant 0.000000e+00 : f32
    %6 = vector.broadcast %cst_5 : f32 to vector<8x64xf32>
    %7 = arith.maximumf %5, %6 : vector<8x64xf32>
    %c0_6 = arith.constant 0 : index
    %c0_7 = arith.constant 0 : index
    %8 = vector.load %arg4[%c0_6, %c0_7] : memref<1x64xf32, #tpu.memory_space<vmem>>, vector<1x64xf32>
    %9 = vector.broadcast %8 : vector<1x64xf32> to vector<8x64xf32>
    %10 = arith.mulf %7, %9 : vector<8x64xf32>
    %cst_8 = arith.constant dense<0.000000e+00> : vector<8xf32>
    %11 = vector.multi_reduction <add>, %10, %cst_8 [1] : vector<8x64xf32> to vector<8xf32>
    %12 = vector.shape_cast %11 : vector<8xf32> to vector<8x1xf32>
    %c0_9 = arith.constant 0 : index
    %c0_10 = arith.constant 0 : index
    %13 = vector.load %arg5[%c0_9, %c0_10] : memref<1x1xf32, #tpu.memory_space<vmem>>, vector<1x1xf32>
    %14 = vector.broadcast %13 : vector<1x1xf32> to vector<8x1xf32>
    %15 = arith.addf %12, %14 : vector<8x1xf32>
    %c0_11 = arith.constant 0 : index
    %c0_12 = arith.constant 0 : index
    %16 = vector.load %arg6[%c0_11, %c0_12] : memref<8x1xf32, #tpu.memory_space<vmem>>, vector<8x1xf32>
    tpu.vector_store %arg6[%c0_11, %c0_12], %15 {strides = array<i32>} : memref<8x1xf32, #tpu.memory_space<vmem>>, vector<8x1xf32>,
    return
  }
  func.func @transform_0(%arg0: i32) -> (i32, i32) {
    %c0_i32 = arith.constant 0 : i32
    %c0_i32_0 = arith.constant 0 : i32
    return %arg0, %c0_i32 : i32, i32
  }
  func.func @transform_1(%arg0: i32) -> (i32, i32) {
    %c0_i32 = arith.constant 0 : i32
    %c0_i32_0 = arith.constant 0 : i32
    %c0_i32_1 = arith.constant 0 : i32
    return %c0_i32, %c0_i32_0 : i32, i32
  }
  func.func @transform_2(%arg0: i32) -> (i32, i32) {
    %c0_i32 = arith.constant 0 : i32
    %c0_i32_0 = arith.constant 0 : i32
    %c0_i32_1 = arith.constant 0 : i32
    return %c0_i32, %c0_i32_0 : i32, i32
  }
  func.func @transform_3(%arg0: i32) -> (i32, i32) {
    %c0_i32 = arith.constant 0 : i32
    %c0_i32_0 = arith.constant 0 : i32
    %c0_i32_1 = arith.constant 0 : i32
    return %c0_i32, %c0_i32_0 : i32, i32
  }
  func.func @transform_4(%arg0: i32) -> (i32, i32) {
    %c0_i32 = arith.constant 0 : i32
    %c0_i32_0 = arith.constant 0 : i32
    %c0_i32_1 = arith.constant 0 : i32
    return %c0_i32, %c0_i32_0 : i32, i32
  }
  func.func @transform_5(%arg0: i32) -> (i32, i32) {
    %c0_i32 = arith.constant 0 : i32
    %c0_i32_0 = arith.constant 0 : i32
    return %arg0, %c0_i32 : i32, i32
  }
}

</mosaic_0001>

<bundles_post_ra>
// kernel: tpu_custom_call.1
= control target key start
LH: loop header
LB: loop body
LE: loop exit
PB: predicated region body
PF: predicated region fallthrough
CT: control target
= control target key end

     0   :  { %s317_s0 = inlined_call_operand.hbm [shape: f32[8,24], index: 0, kind: input, shape index: {}]   ;;  %s318_s1 = inlined_call_operand.hbm [shape: f32[24,64], index: 1, kind: input, shape index: {}]   ;;  %s319_s2 = inlined_call_operand.vmem [shape: f32[1,64], index: 2, kind: input, shape index: {}]   ;;  %s320_s3 = inlined_call_operand.vmem [shape: f32[1,64], index: 3, kind: input, shape index: {}]   ;;  %s321_s4 = inlined_call_operand.<no memory space> [shape: f32[1,1], index: 4, kind: input, shape index: {}]   ;;  %s322_s5 = inlined_call_operand.vmem [shape: f32[8,1], index: 5, kind: output, shape index: {}]  }
   0x1   :  { %v10_v0 = vstv %s321_s4 }
   0x2   :  { %11 = vst [vmem:[#allocation2] sm:$0x1] %v10_v0 }
   0x3   :  { %12 = vsyncpa [#allocation4], 0 }
   0x4   :  { %13 = vsyncpa [#allocation6], 0  ;;  %s237_s20 = smov [#allocation3]   ;;  %s238_s22 = smov [#allocation5]  }
   0x5   :  { %s20_s21 = sshll.u32 %s237_s20, 4  ;;  %s29_s23 = sshll.u32 %s238_s22, 4  ;;  %s21_s21 = int_to_ptr.vmem [resolvable:$true] %s20_s21  ;;  %s277_s23 = int_to_ptr.vmem [resolvable:$true] %s29_s23 }
   0x6   :  { %s189_s26 = scalar_lea.hbm %s317_s0, 128 }
   0x7   :  { %p190_p0 = scmp.ne.s32.totalorder %s317_s0, %s189_s26  ;;  %p193_p1 = scmp.lt.u32.totalorder %s189_s26, %s317_s0 }
   0x9   :  { %p195_p2 = pnand %p193_p1, %p190_p0 }
   0xb   :  { %198 = shalt.err (!%p195_p2)
}
   0xc   :  { %s199_s30 = scalar_lea.vmem %s21_s21, 128  ;;  %p204_p4 = scmp.lt.s32.totalorder %s21_s21, %s21_s21 }
   0xd   :  { %p200_p3 = scmp.ne.s32.totalorder %s21_s21, %s199_s30  ;;  %p205_p5 = scmp.lt.s32.totalorder %s199_s30, %s199_s30 }
   0xf   :  { %p206_p6 = por %p205_p5, %p204_p4 }
  0x11   :  { %p207_p7 = pnand %p206_p6, %p200_p3 }
  0x13   :  { %210 = shalt.err (!%p207_p7)
}
  0x14   :  { %23 = dma.hbm_to_vmem [thread:$0]  %s317_s0, 128, %s21_s21, [#allocation4]  }
  0x15   :  { %s211_s10 = scalar_lea.hbm %s318_s1, 384 }
  0x16   :  { %p212_p8 = scmp.ne.s32.totalorder %s318_s1, %s211_s10  ;;  %p215_p9 = scmp.lt.u32.totalorder %s211_s10, %s318_s1 }
  0x18   :  { %p217_p10 = pnand %p215_p9, %p212_p8 }
  0x1a   :  { %220 = shalt.err (!%p217_p10)
}
  0x1b   :  { %s221_s15 = scalar_lea.vmem %s277_s23, 384  ;;  %p226_p12 = scmp.lt.s32.totalorder %s277_s23, %s277_s23 }
  0x1c   :  { %p222_p11 = scmp.ne.s32.totalorder %s277_s23, %s221_s15  ;;  %p227_p13 = scmp.lt.s32.totalorder %s221_s15, %s221_s15 }
  0x1e   :  { %p228_p0 = por %p227_p13, %p226_p12 }
  0x20   :  { %p229_p1 = pnand %p228_p0, %p222_p11 }
  0x22   :  { %232 = shalt.err (!%p229_p1)
}
  0x23   :  { %s239_s0 = smov 128   ;;  %s240_s16 = smov 8  }
  0x24   :  { %35 = dma.hbm_to_vmem [thread:$0]  %s318_s1, 384, %s277_s23, [#allocation6], %s239_s0, %s239_s0, %s240_s16  }
  0x25   :  { %233 = dma.done.wait [#allocation4], 128  }
  0x26   :  { %234 = vsyncadd [#allocation4], 4294967168 }
  0x27   :  { %235 = dma.done.wait [#allocation6], 384  }
  0x28   :  { %236 = vsyncadd [#allocation6], 4294966912  ;;  %v241_v1 = vmov 0.0|0.0   ;;  %vm242_vm0 = vmmov 0   ;;  %v243_v2 = vmov 0.0   ;;  %v49_v3 = vld [vmem:[#allocation5] sm:$0xff] }
  0x29   :  { %179 = vmatprep.subr.bf16.mxu0 %v241_v1  ;;  %176 = vmatprep.mubr.msk.f32.mxu0 %vm242_vm0, %v243_v2  ;;  %v50_v4 = vld [vmem:[#allocation5 + $0x8] sm:$0xff]  ;;  %v51_v6 = vld [vmem:[#allocation5 + $0x10] sm:$0xff]  ;;  %v48_v7 = vld [vmem:[#allocation3] sm:$0xff]  ;;  %vm59_vm1 = vcmask 195584   ;;  %vm142_vm2 = vcmask 523264   ;;  %vm154_vm3 = vcmask 7168  }
  0x2a   :  { %v180_v5 = vpack.c.bf16 %v50_v4, %v49_v3  ;;  %v162_v8 = vld [vmem:[%s319_s2] ss:$0 sm:$0xff] }
  0x2b   :  { %v164_v12 = vld [vmem:[%s320_s3] ss:$0 sm:$0xff] }
  0x2c   :  { %181 = vmatpush3.bf16.msra.mxu0 %v180_v5  ;;  %v165_v16 = vld [vmem:[#allocation2] ss:$0 sm:$0xff] }
  0x2d   :  { %174 = vmatprep.subr.mxu0 %v243_v2 }
  0x30   :  { %175 = vmatpush3.msra.mxu0 %v51_v6 }
  0x31   :  { %177 = vmatmul.mubr.msk.f32.vlgmr.msra.gmra.mrb[0].mxu0 %vm59_vm1, %v48_v7 }
 0x104   :  { %v129_v9 = vpop.f32.mrb[0].mxu0 }
 0x105   :  { %v130_v10 = vadd.f32 %v162_v8, %v129_v9  ;;  %v178_v11 = vpop.f32.mrb[1].mxu0 }
 0x107   :  { %v133_v13 = vmax.f32 %v130_v10, 0.0 }
 0x109   :  { %v141_v14 = vmul.f32 %v164_v12, %v133_v13 }
 0x10b   :  { %v143_v15 = vsel %vm142_vm2, %v141_v14, 0.0 }
 0x10c   :  { %144 = vadd.xlane.f32.xlu0 %v143_v15 }
 0x199   :  { %v145_v17 = vpop.xlane.xlu0 %144 }
 0x19a   :  { %v153_v18 = vadd.f32 %v165_v16, %v145_v17 }
 0x19c   :  { %155 = vst.msk [vmem:[%s322_s5] sm:$0xff] %vm154_vm3, %v153_v18 }
 0x19d   :  { %160 = vsyncpa [#allocation4], 1 }
 0x19e   :  { %161 = vsyncpa [#allocation6], 1 }

</bundles_post_ra>
